<compile_context>
chip_gen: v7x
topology: tpu7x:2x2x1
jax: 0.10.0
libtpu: 0.0.40
codegen_flags: <defaults>
</compile_context>

<pallas_src>
import math

import jax
import jax.numpy as jnp
from jax.experimental import pallas as pl
from jax.experimental.pallas import tpu as pltpu


def _round_up(n, m):
    return ((n + m - 1) // m) * m


# ---------------------------------------------------------------- kernels ----
def _gcn_fused_kernel(x_ref, adj_ref, w_ref, b_ref, out_ref):
    """Single-block fused GCN layer: out = adj @ (x @ W) + b, all in VMEM."""
    support = jnp.dot(x_ref[...], w_ref[...],
                      preferred_element_type=jnp.float32)
    out_ref[...] = (
        jnp.dot(adj_ref[...], support.astype(jnp.bfloat16),
                preferred_element_type=jnp.float32)
        + b_ref[...]
    ).astype(out_ref.dtype)


def _support_kernel(x_ref, w_ref, sup_ref):
    """Pass 1 (tiled path): support row tile = x row tile @ W (bf16 in, bf16 out)."""
    sup_ref[...] = jnp.dot(
        x_ref[...], w_ref[...], preferred_element_type=jnp.float32
    ).astype(sup_ref.dtype)


def _adj_matmul_kernel(adj_ref, sup_ref, b_ref, out_ref, acc_ref):
    """Pass 2 (tiled path): out row tile = sum_k adj(i,k) @ support(k) + b.

    k is the last ("arbitrary") grid axis; the f32 accumulator is zeroed at
    k == 0 and written back (plus bias) at the last k.  The row axis i carries
    no cross-step state, so it is safe to mark "parallel".
    """
    k = pl.program_id(1)

    @pl.when(k == 0)
    def _():
        acc_ref[...] = jnp.zeros_like(acc_ref)

    acc_ref[...] += jnp.dot(adj_ref[...], sup_ref[...],
                            preferred_element_type=jnp.float32)

    @pl.when(k == pl.num_programs(1) - 1)
    def _():
        out_ref[...] = (acc_ref[...] + b_ref[...]).astype(out_ref.dtype)


# ---------------------------------------------------------------- wrapper ----
def graph_convolution(x, adj, weight, bias=None, *, tile_m=256, tile_k=512):
    """Pallas TPU forward of GraphConvolution: adj @ (x @ weight) (+ bias)."""
    n, d_in = x.shape
    d_out = weight.shape[1]

    d_in_p = _round_up(d_in, 128)        # lane-dense contraction dim
    d_out_p = _round_up(d_out, 128)      # lane-dense output dim (unmasked vst)

    # ---- single-block fast path: gate on an explicit VMEM byte budget ------
    n_p8 = _round_up(n, 8)
    single_block_bytes = (
        n_p8 * d_in_p * 2          # x (bf16)
        + n_p8 * n_p8 * 2          # adj (bf16)
        + d_in_p * d_out_p * 2     # W (bf16)
        + d_out_p * 4              # bias (f32)
        + n_p8 * d_out_p * 4       # out (f32)
        + n_p8 * d_out_p * 4       # f32 support intermediate inside the kernel
    )
    single_block = single_block_bytes <= (12 << 20)   # < v5e 16 MiB scoped VMEM

    wb = jnp.pad(weight.astype(jnp.bfloat16),
                 ((0, d_in_p - d_in), (0, d_out_p - d_out)))
    bp = jnp.zeros((1, d_out_p), jnp.float32)
    if bias is not None:
        bp = bp.at[0, :d_out].set(bias.astype(jnp.float32).reshape(-1))

    flops = 2 * n * d_in * d_out + 2 * n * n * d_out

    if single_block:
        n_p = n_p8
        xb = jnp.pad(x.astype(jnp.bfloat16),
                     ((0, n_p - n), (0, d_in_p - d_in)))
        adjb = jnp.pad(adj.astype(jnp.bfloat16),
                       ((0, n_p - n), (0, n_p - n)))
        out_p = pl.pallas_call(
            _gcn_fused_kernel,
            out_shape=jax.ShapeDtypeStruct((n_p, d_out_p), jnp.float32),
            cost_estimate=pl.CostEstimate(
                flops=flops, transcendentals=0,
                bytes_accessed=int(n_p * d_in_p * 2 + n_p * n_p * 2
                                   + d_in_p * d_out_p * 2 + d_out_p * 4
                                   + n_p * d_out_p * 4)),
        )(xb, adjb, wb, bp)
        return out_p[:n, :d_out]

    # ---- tiled path ---------------------------------------------------------
    # Tile sizes: tile_m (rows of adj / out, multiple of 8) and tile_k
    # (contraction over nodes, multiple of 128).  n is padded to a common
    # multiple so both grid axes divide evenly.
    tile_m = max(8, min(tile_m, _round_up(n, 8)))
    tile_k = max(128, min(tile_k, _round_up(n, 128)))
    n_p = _round_up(n, math.lcm(tile_m, tile_k))

    xb = jnp.pad(x.astype(jnp.bfloat16), ((0, n_p - n), (0, d_in_p - d_in)))
    adjb = jnp.pad(adj.astype(jnp.bfloat16), ((0, n_p - n), (0, n_p - n)))

    # Pass 1: support = x @ W  (row-tiled, W resident, bf16 out for pass 2).
    # TODO(synk): if d_in were very large, this pass would also want a k axis.
    support = pl.pallas_call(
        _support_kernel,
        out_shape=jax.ShapeDtypeStruct((n_p, d_out_p), jnp.bfloat16),
        grid=(n_p // tile_m,),
        in_specs=[
            pl.BlockSpec((tile_m, d_in_p), lambda i: (i, 0)),     # x row tile
            pl.BlockSpec((d_in_p, d_out_p), lambda i: (0, 0)),    # W (resident)
        ],
        out_specs=pl.BlockSpec((tile_m, d_out_p), lambda i: (i, 0)),
        compiler_params=pltpu.CompilerParams(
            dimension_semantics=("parallel",)),
        cost_estimate=pl.CostEstimate(
            flops=2 * n * d_in * d_out, transcendentals=0,
            bytes_accessed=int(n_p * d_in_p * 2 + d_in_p * d_out_p * 2
                               + n_p * d_out_p * 2)),
    )(xb, wb)

    # Pass 2: out = adj @ support + b, k-tiled contraction with f32 accumulator.
    grid = (n_p // tile_m, n_p // tile_k)
    out_p = pl.pallas_call(
        _adj_matmul_kernel,
        out_shape=jax.ShapeDtypeStruct((n_p, d_out_p), jnp.float32),
        grid=grid,
        in_specs=[
            pl.BlockSpec((tile_m, tile_k), lambda i, k: (i, k)),    # adj tile
            pl.BlockSpec((tile_k, d_out_p), lambda i, k: (k, 0)),   # support tile
            pl.BlockSpec((1, d_out_p), lambda i, k: (0, 0)),        # bias
        ],
        out_specs=pl.BlockSpec((tile_m, d_out_p), lambda i, k: (i, 0)),
        scratch_shapes=[pltpu.VMEM((tile_m, d_out_p), jnp.float32)],
        compiler_params=pltpu.CompilerParams(
            dimension_semantics=("parallel", "arbitrary")),
        cost_estimate=pl.CostEstimate(
            flops=2 * n * n * d_out, transcendentals=0,
            bytes_accessed=int(n_p * n_p * 2 + n_p * d_out_p * 2
                               + d_out_p * 4 + n_p * d_out_p * 4)),
    )(adjb, support, bp)

    return out_p[:n, :d_out]


# ------------------------------------------------------------------ main ----
if __name__ == "__main__":
    key = jax.random.PRNGKey(0)
    k_x, k_w, k_a, k_x2, k_a2 = jax.random.split(key, 5)

    # SoRL instantiates GraphConvolution(200, 200); keep node count small.
    n, d_in, d_out = 8, 200, 200
    x = jax.random.normal(k_x, (n, d_in), jnp.float32)

    # xavier_normal_ weight init, bias filled with 0 (matches the module).
    std = (2.0 / (d_in + d_out)) ** 0.5
    weight = std * jax.random.normal(k_w, (d_in, d_out), jnp.float32)
    bias = jnp.zeros((d_out,), jnp.float32)

    a = (jax.random.uniform(k_a, (n, n)) > 0.6).astype(jnp.float32)
    adj = jnp.maximum(jnp.maximum(a, a.T), jnp.eye(n, dtype=jnp.float32))

    out = graph_convolution(x, adj, weight, bias)
    out = jax.block_until_ready(out)
    ref = adj @ (x @ weight) + bias
    assert out.shape == (n, d_out)
    assert jnp.allclose(out, ref, rtol=3e-2, atol=3e-1), float(
        jnp.max(jnp.abs(out - ref)))

    # Also exercise the two-pass tiled path (row tiles + k-contraction axis).
    n2 = 512
    x2 = jax.random.normal(k_x2, (n2, d_in), jnp.float32)
    a2 = (jax.random.uniform(k_a2, (n2, n2)) > 0.95).astype(jnp.float32)
    adj2 = jnp.maximum(jnp.maximum(a2, a2.T), jnp.eye(n2, dtype=jnp.float32))

    # Force the tiled path regardless of the VMEM budget heuristic, so the
    # k-accumulation code path is covered: call the two passes via a large
    # enough problem?  n2=512 fits single-block, so call with a monkeypatched
    # budget by invoking the tiled code directly through small tiles.
    def graph_convolution_tiled(x, adj, weight, bias, tile_m, tile_k):
        # Same wrapper but skipping the single-block shortcut.
        import types
        nloc, d_in_l = x.shape
        # Re-use the public wrapper by temporarily making the single-block
        # budget fail: easiest is to just call the tiled section via the same
        # function with a tiny budget — instead, inline: pad + two passes.
        return _graph_convolution_force_tiled(x, adj, weight, bias,
                                              tile_m=tile_m, tile_k=tile_k)

    def _graph_convolution_force_tiled(x, adj, weight, bias, *, tile_m, tile_k):
        n_, d_in_ = x.shape
        d_out_ = weight.shape[1]
        d_in_p = _round_up(d_in_, 128)
        d_out_p = _round_up(d_out_, 128)
        tile_m = max(8, min(tile_m, _round_up(n_, 8)))
        tile_k = max(128, min(tile_k, _round_up(n_, 128)))
        n_p = _round_up(n_, math.lcm(tile_m, tile_k))
        xb = jnp.pad(x.astype(jnp.bfloat16), ((0, n_p - n_), (0, d_in_p - d_in_)))
        adjb = jnp.pad(adj.astype(jnp.bfloat16), ((0, n_p - n_), (0, n_p - n_)))
        wb = jnp.pad(weight.astype(jnp.bfloat16),
                     ((0, d_in_p - d_in_), (0, d_out_p - d_out_)))
        bp = jnp.zeros((1, d_out_p), jnp.float32).at[0, :d_out_].set(
            bias.astype(jnp.float32).reshape(-1))
        support = pl.pallas_call(
            _support_kernel,
            out_shape=jax.ShapeDtypeStruct((n_p, d_out_p), jnp.bfloat16),
            grid=(n_p // tile_m,),
            in_specs=[pl.BlockSpec((tile_m, d_in_p), lambda i: (i, 0)),
                      pl.BlockSpec((d_in_p, d_out_p), lambda i: (0, 0))],
            out_specs=pl.BlockSpec((tile_m, d_out_p), lambda i: (i, 0)),
            compiler_params=pltpu.CompilerParams(
                dimension_semantics=("parallel",)),
        )(xb, wb)
        out_p = pl.pallas_call(
            _adj_matmul_kernel,
            out_shape=jax.ShapeDtypeStruct((n_p, d_out_p), jnp.float32),
            grid=(n_p // tile_m, n_p // tile_k),
            in_specs=[pl.BlockSpec((tile_m, tile_k), lambda i, k: (i, k)),
                      pl.BlockSpec((tile_k, d_out_p), lambda i, k: (k, 0)),
                      pl.BlockSpec((1, d_out_p), lambda i, k: (0, 0))],
            out_specs=pl.BlockSpec((tile_m, d_out_p), lambda i, k: (i, 0)),
            scratch_shapes=[pltpu.VMEM((tile_m, d_out_p), jnp.float32)],
            compiler_params=pltpu.CompilerParams(
                dimension_semantics=("parallel", "arbitrary")),
        )(adjb, support, bp)
        return out_p[:n_, :d_out_]

    out2 = graph_convolution_tiled(x2, adj2, weight, bias, tile_m=256, tile_k=256)
    out2 = jax.block_until_ready(out2)
    ref2 = adj2 @ (x2 @ weight) + bias
    assert out2.shape == (n2, d_out)
    assert jnp.allclose(out2, ref2, rtol=3e-2, atol=5e-1), float(
        jnp.max(jnp.abs(out2 - ref2)))

    print("KERNEL_OK")
</pallas_src>

<mosaic_0001>
module attributes {stable_mosaic.version = 11 : i64} {
  func.func @_gcn_fused_kernel(%arg0: memref<8x256xbf16, #tpu.memory_space<vmem>>, %arg1: memref<8x8xbf16, #tpu.memory_space<vmem>>, %arg2: memref<256x256xbf16, #tpu.memory_space<vmem>>, %arg3: memref<1x256xf32, #tpu.memory_space<vmem>>, %arg4: memref<8x256xf32, #tpu.memory_space<vmem>>) attributes {dimension_semantics = [], scalar_prefetch = 0 : i64, scratch_operands = 0 : i64, tpu.core_type = #tpu.core_type<tc>} {
    %c0 = arith.constant 0 : index
    %c0_0 = arith.constant 0 : index
    %0 = vector.load %arg0[%c0, %c0_0] : memref<8x256xbf16, #tpu.memory_space<vmem>>, vector<8x256xbf16>
    %c0_1 = arith.constant 0 : index
    %c0_2 = arith.constant 0 : index
    %1 = vector.load %arg2[%c0_1, %c0_2] : memref<256x256xbf16, #tpu.memory_space<vmem>>, vector<256x256xbf16>
    %cst = arith.constant dense<0.000000e+00> : vector<8x256xf32>
    %2 = tpu.matmul %0, %1, %cst {dimension_numbers = #tpu.dot_dimension_numbers<[1], [0], [0], [1], [0, 0, 1, 1], [], []>} : vector<8x256xbf16>, vector<256x256xbf16>, vector<8x256xf32> -> vector<8x256xf32>
    %c0_3 = arith.constant 0 : index
    %c0_4 = arith.constant 0 : index
    %3 = vector.load %arg1[%c0_3, %c0_4] : memref<8x8xbf16, #tpu.memory_space<vmem>>, vector<8x8xbf16>
    %4 = arith.truncf %2 : vector<8x256xf32> to vector<8x256xbf16>
    %cst_5 = arith.constant dense<0.000000e+00> : vector<8x256xf32>
    %5 = tpu.matmul %3, %4, %cst_5 {dimension_numbers = #tpu.dot_dimension_numbers<[1], [0], [0], [1], [0, 0, 1, 1], [], []>} : vector<8x8xbf16>, vector<8x256xbf16>, vector<8x256xf32> -> vector<8x256xf32>
    %c0_6 = arith.constant 0 : index
    %c0_7 = arith.constant 0 : index
    %6 = vector.load %arg3[%c0_6, %c0_7] : memref<1x256xf32, #tpu.memory_space<vmem>>, vector<1x256xf32>
    %7 = vector.broadcast %6 : vector<1x256xf32> to vector<8x256xf32>
    %8 = arith.addf %5, %7 : vector<8x256xf32>
    %c0_8 = arith.constant 0 : index
    %c0_9 = arith.constant 0 : index
    %9 = vector.load %arg4[%c0_8, %c0_9] : memref<8x256xf32, #tpu.memory_space<vmem>>, vector<8x256xf32>
    tpu.vector_store %arg4[%c0_8, %c0_9], %8 {strides = array<i32>} : memref<8x256xf32, #tpu.memory_space<vmem>>, vector<8x256xf32>,
    return
  }
}

</mosaic_0001>

<bundles_post_ra>
// kernel: tpu_custom_call.1
= control target key start
LH: loop header
LB: loop body
LE: loop exit
PB: predicated region body
PF: predicated region fallthrough
CT: control target
= control target key end

     0   :  { %9 = vsyncpa [#allocation3], 0  ;;  %s652_s0 = inlined_call_operand.hbm [shape: bf16[8,256], index: 0, kind: input, shape index: {}]   ;;  %s653_s1 = inlined_call_operand.hbm [shape: bf16[8,8], index: 1, kind: input, shape index: {}]   ;;  %s654_s2 = inlined_call_operand.hbm [shape: bf16[256,256], index: 2, kind: input, shape index: {}]   ;;  %s655_s3 = inlined_call_operand.vmem [shape: f32[1,256], index: 3, kind: input, shape index: {}]   ;;  %s656_s4 = inlined_call_operand.hbm [shape: f32[8,256], index: 4, kind: output, shape index: {}]  }
   0x1   :  { %10 = vsyncpa [#allocation6], 0 }
   0x2   :  { %11 = vsyncpa [#allocation4], 0  ;;  %s569_s15 = smov [#allocation5]   ;;  %s570_s17 = smov [#allocation2]  }
   0x3   :  { %s28_s16 = sshll.u32 %s569_s15, 4  ;;  %s18_s18 = sshll.u32 %s570_s17, 4  ;;  %s29_s16 = int_to_ptr.vmem [resolvable:$true] %s28_s16  ;;  %s19_s18 = int_to_ptr.vmem [resolvable:$true] %s18_s18 }
   0x4   :  { %s475_s21 = scalar_lea.hbm %s653_s1, 64 }
   0x5   :  { %p476_p0 = scmp.ne.s32.totalorder %s653_s1, %s475_s21  ;;  %p479_p1 = scmp.lt.u32.totalorder %s475_s21, %s653_s1 }
   0x7   :  { %p481_p2 = pnand %p479_p1, %p476_p0 }
   0x9   :  { %484 = shalt.err (!%p481_p2)
}
   0xa   :  { %s485_s26 = scalar_lea.vmem %s29_s16, 64  ;;  %p490_p4 = scmp.lt.s32.totalorder %s29_s16, %s29_s16 }
   0xb   :  { %p486_p3 = scmp.ne.s32.totalorder %s29_s16, %s485_s26  ;;  %p491_p5 = scmp.lt.s32.totalorder %s485_s26, %s485_s26 }
   0xd   :  { %p492_p6 = por %p491_p5, %p490_p4 }
   0xf   :  { %p493_p7 = pnand %p492_p6, %p486_p3 }
  0x11   :  { %496 = shalt.err (!%p493_p7)
}
  0x12   :  { %31 = dma.hbm_to_vmem [thread:$0]  %s653_s1, 64, %s29_s16, [#allocation6]  }
  0x13   :  { %s497_s5 = scalar_lea.hbm %s652_s0, 128 }
  0x14   :  { %p498_p8 = scmp.ne.s32.totalorder %s652_s0, %s497_s5  ;;  %p501_p9 = scmp.lt.u32.totalorder %s497_s5, %s652_s0 }
  0x16   :  { %p503_p10 = pnand %p501_p9, %p498_p8 }
  0x18   :  { %506 = shalt.err (!%p503_p10)
}
  0x19   :  { %s507_s10 = scalar_lea.vmem %s19_s18, 128  ;;  %p512_p12 = scmp.lt.s32.totalorder %s19_s18, %s19_s18 }
  0x1a   :  { %p508_p11 = scmp.ne.s32.totalorder %s19_s18, %s507_s10  ;;  %p513_p13 = scmp.lt.s32.totalorder %s507_s10, %s507_s10 }
  0x1c   :  { %p514_p0 = por %p513_p13, %p512_p12 }
  0x1e   :  { %p515_p1 = pnand %p514_p0, %p508_p11 }
  0x20   :  { %518 = shalt.err (!%p515_p1)
}
  0x21   :  { %21 = dma.hbm_to_vmem [thread:$0]  %s652_s0, 128, %s19_s18, [#allocation3]  }
  0x22   :  { %s571_s12 = smov [#allocation7]   ;;  %s519_s16 = scalar_lea.hbm %s654_s2, 4096 }
  0x23   :  { %s37_s13 = sshll.u32 %s571_s12, 4  ;;  %p520_p2 = scmp.ne.s32.totalorder %s654_s2, %s519_s16  ;;  %s38_s13 = int_to_ptr.vmem [resolvable:$true] %s37_s13 }
  0x24   :  { %p523_p3 = scmp.lt.u32.totalorder %s519_s16, %s654_s2 }
  0x26   :  { %p525_p4 = pnand %p523_p3, %p520_p2 }
  0x28   :  { %528 = shalt.err (!%p525_p4)
}
  0x29   :  { %s529_s22 = scalar_lea.vmem %s38_s13, 4096  ;;  %p534_p6 = scmp.lt.s32.totalorder %s38_s13, %s38_s13 }
  0x2a   :  { %p530_p5 = scmp.ne.s32.totalorder %s38_s13, %s529_s22  ;;  %p535_p7 = scmp.lt.s32.totalorder %s529_s22, %s529_s22 }
  0x2c   :  { %p536_p8 = por %p535_p7, %p534_p6 }
  0x2e   :  { %p537_p9 = pnand %p536_p8, %p530_p5 }
  0x30   :  { %540 = shalt.err (!%p537_p9)
}
  0x31   :  { %s572_s0 = smov 128   ;;  %s573_s18 = smov 8  }
  0x32   :  { %43 = dma.hbm_to_vmem [thread:$0]  %s654_s2, 4096, %s38_s13, [#allocation6], %s572_s0, %s572_s0, %s573_s18  }
  0x33   :  { %563 = dma.done.wait [#allocation3], 128  }
  0x34   :  { %564 = vsyncadd [#allocation3], 4294967168 }
  0x35   :  { %565 = dma.done.wait [#allocation6], 4160  }
  0x36   :  { %566 = vsyncadd [#allocation6], 4294963136  ;;  %v425_v0 = vld [vmem:[#allocation7 + $0x4] ss:$8 sps:$4 sm:$0xff]   ;;  %v427_v1 = vld [vmem:[#allocation7] ss:$8 sps:$4 sm:$0xff]   ;;  %v302_v44 = vlaneseq }
  0x37   :  { %256 = vmatprep.subr.bf16.mxu0 %v425_v0  ;;  %v428_v2 = vld [vmem:[#allocation7 + $0x14] ss:$8 sps:$4 sm:$0xff]   ;;  %v430_v3 = vld [vmem:[#allocation7 + $0x10] ss:$8 sps:$4 sm:$0xff]   ;;  %v431_v4 = vld [vmem:[#allocation7 + $0x24] ss:$8 sps:$4 sm:$0xff]  }
  0x38   :  { %257 = vmatpush1.bf16.msra.mxu0 %v427_v1  ;;  %v433_v5 = vld [vmem:[#allocation7 + $0x20] ss:$8 sps:$4 sm:$0xff]   ;;  %v434_v6 = vld [vmem:[#allocation7 + $0x34] ss:$8 sps:$4 sm:$0xff]   ;;  %v436_v7 = vld [vmem:[#allocation7 + $0x30] ss:$8 sps:$4 sm:$0xff]  }
  0x39   :  { %258 = vmatprep.subr.bf16.mxu0 %v428_v2  ;;  %v437_v8 = vld [vmem:[#allocation7 + $0x44] ss:$8 sps:$4 sm:$0xff]   ;;  %v439_v9 = vld [vmem:[#allocation7 + $0x40] ss:$8 sps:$4 sm:$0xff]   ;;  %v440_v10 = vld [vmem:[#allocation7 + $0x54] ss:$8 sps:$4 sm:$0xff]  }
  0x3a   :  { %v442_v11 = vld [vmem:[#allocation7 + $0x50] ss:$8 sps:$4 sm:$0xff]   ;;  %v443_v12 = vld [vmem:[#allocation7 + $0x64] ss:$8 sps:$4 sm:$0xff]   ;;  %v445_v15 = vld [vmem:[#allocation7 + $0x60] ss:$8 sps:$4 sm:$0xff]  }
  0x3b   :  { %v56_v13 = vld [vmem:[#allocation2] sm:$0xff]  ;;  %v449_v18 = vld [vmem:[#allocation7 + $0x84] ss:$8 sps:$4 sm:$0xff]   ;;  %v451_v19 = vld [vmem:[#allocation7 + $0x80] ss:$8 sps:$4 sm:$0xff]   ;;  %v574_v35 = vmov 0  }
  0x3c   :  { %259 = vmatpush1.bf16.msra.mxu0 %v430_v3  ;;  %v383_v14 = vcombine.high %v56_v13, %v56_v13  ;;  %v446_v16 = vld [vmem:[#allocation7 + $0x74] ss:$8 sps:$4 sm:$0xff]   ;;  %v448_v17 = vld [vmem:[#allocation7 + $0x70] ss:$8 sps:$4 sm:$0xff]   ;;  %v455_v22 = vld [vmem:[#allocation7 + $0xa4] ss:$8 sps:$4 sm:$0xff]   ;;  %v382_v34 = vcombine.low %v56_v13, %v56_v13  ;;  %355 = vmatprep.mubr.bf16.mxu1 %v574_v35 }
  0x3d   :  { %260 = vmatprep.subr.bf16.mxu0 %v431_v4  ;;  %v452_v20 = vld [vmem:[#allocation7 + $0x94] ss:$8 sps:$4 sm:$0xff]   ;;  %v454_v21 = vld [vmem:[#allocation7 + $0x90] ss:$8 sps:$4 sm:$0xff]   ;;  %v457_v23 = vld [vmem:[#allocation7 + $0xa0] ss:$8 sps:$4 sm:$0xff]  }
  0x3e   :  { %288 = vmatprep.mubr.bf16.mxu0 %v383_v14  ;;  %v458_v24 = vld [vmem:[#allocation7 + $0xb4] ss:$8 sps:$4 sm:$0xff]   ;;  %v460_v25 = vld [vmem:[#allocation7 + $0xb0] ss:$8 sps:$4 sm:$0xff]   ;;  %v461_v26 = vld [vmem:[#allocation7 + $0xc4] ss:$8 sps:$4 sm:$0xff]  }
  0x3f   :  { %v463_v27 = vld [vmem:[#allocation7 + $0xc0] ss:$8 sps:$4 sm:$0xff]   ;;  %v464_v28 = vld [vmem:[#allocation7 + $0xd4] ss:$8 sps:$4 sm:$0xff]   ;;  %v466_v29 = vld [vmem:[#allocation7 + $0xd0] ss:$8 sps:$4 sm:$0xff]  }
  0x40   :  { %261 = vmatpush1.bf16.msra.mxu0 %v433_v5  ;;  %v467_v30 = vld [vmem:[#allocation7 + $0xe4] ss:$8 sps:$4 sm:$0xff]   ;;  %v469_v31 = vld [vmem:[#allocation7 + $0xe0] ss:$8 sps:$4 sm:$0xff]   ;;  %v470_v32 = vld [vmem:[#allocation7 + $0xf4] ss:$8 sps:$4 sm:$0xff]  }
  0x41   :  { %262 = vmatprep.subr.bf16.mxu0 %v434_v6  ;;  %v472_v33 = vld [vmem:[#allocation7 + $0xf0] ss:$8 sps:$4 sm:$0xff]   ;;  %vm316_vm0 = vcmask 1043456   ;;  %v297_v43 = vld [vmem:[#allocation5] sm:$0xf]  ;;  %vm312_vm1 = vcmask 64512  }
  0x42   :  { %v303_v45 = vshrl.u32 %v302_v44, 7  ;;  %v300_v47 = vld [vmem:[%s655_s3] sm:$0x3]  ;;  %s575_s26 = smov [#allocation8]  }
  0x43   :  { %s372_s27 = sshll.u32 %s575_s26, 4  ;;  %s373_s27 = int_to_ptr.vmem [resolvable:$true] %s372_s27 }
  0x44   :  { %263 = vmatpush1.bf16.msra.mxu0 %v436_v7  ;;  %v304_v46 = vsub.s32 0, %v303_v45  ;;  %v308_v48 = vsub.s32 1, %v303_v45  ;;  %s541_s28 = scalar_lea.vmem %s373_s27, 256  ;;  %p546_p11 = scmp.lt.s32.totalorder %s373_s27, %s373_s27 }
  0x45   :  { %264 = vmatprep.subr.bf16.mxu0 %v437_v8  ;;  %p542_p10 = scmp.ne.s32.totalorder %s373_s27, %s541_s28  ;;  %p547_p12 = scmp.lt.s32.totalorder %s541_s28, %s541_s28 }
  0x46   :  { %v305_v49 = vrot.slane %v300_v47, %v304_v46  ;;  %v309_v50 = vrot.slane %v300_v47, %v308_v48 }
  0x47   :  { %p548_p13 = por %p547_p12, %p546_p11 }
  0x48   :  { %265 = vmatpush1.bf16.msra.mxu0 %v439_v9 }
  0x49   :  { %266 = vmatprep.subr.bf16.mxu0 %v440_v10  ;;  %p549_p0 = pnand %p548_p13, %p542_p10 }
  0x4c   :  { %267 = vmatpush1.bf16.msra.mxu0 %v442_v11 }
  0x4d   :  { %268 = vmatprep.subr.bf16.mxu0 %v443_v12 }
  0x50   :  { %269 = vmatpush1.bf16.msra.mxu0 %v445_v15 }
  0x51   :  { %270 = vmatprep.subr.bf16.mxu0 %v446_v16 }
  0x54   :  { %271 = vmatpush1.bf16.msra.mxu0 %v448_v17 }
  0x55   :  { %272 = vmatprep.subr.bf16.mxu0 %v449_v18 }
  0x58   :  { %273 = vmatpush1.bf16.msra.mxu0 %v451_v19 }
  0x59   :  { %274 = vmatprep.subr.bf16.mxu0 %v452_v20 }
  0x5c   :  { %275 = vmatpush1.bf16.msra.mxu0 %v454_v21 }
  0x5d   :  { %276 = vmatprep.subr.bf16.mxu0 %v455_v22 }
  0x60   :  { %277 = vmatpush1.bf16.msra.mxu0 %v457_v23 }
  0x61   :  { %278 = vmatprep.subr.bf16.mxu0 %v458_v24 }
  0x64   :  { %279 = vmatpush1.bf16.msra.mxu0 %v460_v25 }
  0x65   :  { %280 = vmatprep.subr.bf16.mxu0 %v461_v26 }
  0x68   :  { %281 = vmatpush1.bf16.msra.mxu0 %v463_v27 }
  0x69   :  { %282 = vmatprep.subr.bf16.mxu0 %v464_v28 }
  0x6c   :  { %283 = vmatpush1.bf16.msra.mxu0 %v466_v29 }
  0x6d   :  { %284 = vmatprep.subr.bf16.mxu0 %v467_v30 }
  0x70   :  { %285 = vmatpush1.bf16.msra.mxu0 %v469_v31 }
  0x71   :  { %286 = vmatprep.subr.bf16.mxu0 %v470_v32 }
  0x74   :  { %287 = vmatpush1.bf16.msra.mxu0 %v472_v33 }
  0x77   :  { %289 = vmatmul.mubr.bf16.vlgmr.msra.gmra.mrb[0].mxu0 %v382_v34 }
 0x14a   :  { %v290_v36 = vpop.f32.mrb[0].mxu0 }
 0x14b   :  { %v298_v37 = vpack.c.bf16 %v290_v36, %v290_v36  ;;  %v292_v38 = vpop.f32.mrb[1].mxu0 }
 0x14c   :  { %v299_v39 = vpack.c.bf16 %v292_v38, %v292_v38  ;;  %v294_v40 = vpop.f32.mrb[2].mxu0 }
 0x14d   :  { %v295_v41 = vpop.f32.mrb[3].mxu0  ;;  %v318_v42 = vsel %vm316_vm0, %v298_v37, 0 }
 0x14e   :  { %416 = vmatprep.subr.msk.bf16.mxu1 %vm316_vm0, %v299_v39 }
 0x14f   :  { %324 = vmatpush1.bf16.msra.mxu1 %v318_v42 }
 0x152   :  { %417 = vmatmul.mubr.msk.bf16.vlgmr.msra.gmra.mrb[0].mxu1 %vm312_vm1, %v297_v43 }
 0x225   :  { %v357_v51 = vpop.f32.mrb[0].mxu1 }
 0x226   :  { %v358_v52 = vadd.f32 %v357_v51, %v305_v49  ;;  %v359_v53 = vpop.f32.mrb[1].mxu1 }
 0x227   :  { %v360_v54 = vadd.f32 %v359_v53, %v309_v50  ;;  %v361_v55 = vpop.f32.mrb[2].mxu1 }
 0x228   :  { %364 = vst [vmem:[#allocation8] sm:$0xff] %v358_v52  ;;  %v362_v56 = vpop.f32.mrb[3].mxu1 }
 0x229   :  { %365 = vst [vmem:[#allocation8 + $0x8] sm:$0xff] %v360_v54 }
 0x22a   :  { %552 = shalt.err (!%p549_p0)
}
 0x22b   :  { %s553_s30 = scalar_lea.hbm %s656_s4, 256 }
 0x22c   :  { %p554_p1 = scmp.ne.s32.totalorder %s656_s4, %s553_s30  ;;  %p557_p2 = scmp.lt.u32.totalorder %s553_s30, %s656_s4 }
 0x22e   :  { %p559_p3 = pnand %p557_p2, %p554_p1 }
 0x230   :  { %562 = shalt.err (!%p559_p3)
}
 0x231   :  { %375 = dma.vmem_to_hbm [thread:$0]  %s373_s27, 256, %s656_s4, [#allocation4]  }
 0x232   :  { %567 = dma.done.wait [#allocation4], 256  }
 0x233   :  { %568 = vsyncadd [#allocation4], 4294967040 }
 0x234   :  { %379 = vsyncpa [#allocation3], 1 }
 0x235   :  { %380 = vsyncpa [#allocation6], 1 }
 0x236   :  { %381 = vsyncpa [#allocation4], 1 }

</bundles_post_ra>
